<compile_context>
chip_gen: v6e
topology: v6e:2x2x1
jax: 0.10.0
libtpu: 0.0.40
codegen_flags: <defaults>
</compile_context>

<pallas_src>
import numpy as np
import jax
import jax.numpy as jnp
from jax import lax
from jax.experimental import pallas as pl
from jax.experimental.pallas import tpu as pltpu


def _round_up(x, m):
    return ((x + m - 1) // m) * m


# ----------------------------- Pallas kernel --------------------------------

def nodeprob_kernel(x_ref, w1_ref, b1_ref, w2_ref, b2_ref, o_ref):
    # x : (TILE_N, Hin) native dtype   w1: (Hin, H) same dtype as x
    # b1: (1, H) f32 (time-encode folded in)   w2: (1, H) f32
    # b2: (1, 1) f32 in SMEM                   o : (1, TILE_N) f32 (lane-dense)
    h = jnp.dot(x_ref[...], w1_ref[...], preferred_element_type=jnp.float32)
    h = jnp.maximum(h + b1_ref[...], 0.0)                      # fc1 bias + ReLU (f32 VPU)
    # fc2: contract (1,H) with (TILE_N,H) over H -> (1, TILE_N); keeps stores lane-dense.
    s = lax.dot_general(w2_ref[...], h,
                        dimension_numbers=(((1,), (1,)), ((), ())),
                        preferred_element_type=jnp.float32)
    o_ref[...] = s + b2_ref[0, 0]                              # fc2 scalar bias (SMEM, free)


def nodeprob_mlp(x, w1_hs_t, b1_eff, w2_row, b2_scalar, *,
                 tile_n=8192, vmem_limit_bytes=48 * 1024 * 1024):
    """fc1 -> ReLU -> fc2, tiled over rows; ragged grid, lane-dense output."""
    N, hin = x.shape
    H = w1_hs_t.shape[1]
    if N == 0:
        return jnp.zeros((0,), jnp.float32)

    # Row tile: multiple of 128 (output lane dim), no larger than round_up(N,128).
    tile_n = max(128, min(int(tile_n), _round_up(N, 128)))
    # Keep >= 2 grid steps when there is enough work so v7x's two TensorCores
    # both get row tiles via the "parallel" axis.
    if N > 256:
        tile_n = min(tile_n, _round_up((N + 1) // 2, 128))
    num_tiles = pl.cdiv(N, tile_n)

    w1 = w1_hs_t.astype(x.dtype)                    # tiny (hin,H); match x's streaming dtype
    b1_2d = b1_eff.reshape(1, H).astype(jnp.float32)
    w2_2d = jnp.asarray(w2_row, jnp.float32).reshape(1, H)
    b2_2d = jnp.asarray(b2_scalar, jnp.float32).reshape(1, 1)

    out = pl.pallas_call(
        nodeprob_kernel,
        out_shape=jax.ShapeDtypeStruct((1, N), jnp.float32),
        grid=(num_tiles,),
        in_specs=[
            pl.BlockSpec((tile_n, hin), lambda i: (i, 0)),     # streamed row tiles (native dtype)
            pl.BlockSpec((hin, H), lambda i: (0, 0)),          # VMEM-resident weights
            pl.BlockSpec((1, H), lambda i: (0, 0)),
            pl.BlockSpec((1, H), lambda i: (0, 0)),
            pl.BlockSpec(memory_space=pltpu.MemorySpace.SMEM), # fc2 scalar bias
        ],
        out_specs=pl.BlockSpec((1, tile_n), lambda i: (0, i)),
        compiler_params=pltpu.CompilerParams(
            dimension_semantics=("parallel",),                 # independent row tiles
            vmem_limit_bytes=vmem_limit_bytes),                # > v5e 16MiB default, < v7x 64MiB
    )(x, w1, b1_2d, w2_2d, b2_2d)
    # Padded lanes of the ragged last block were masked on store; nothing past N exists.
    return out[0]
    # TODO(synk): if upstream can supply hidden_states feature-major (hid, N),
    # flip both matmuls to the lane-dense-everywhere orientation (removes the
    # in-kernel relayout of h and the 32->128 lane padding of x).


# ------------------------------ parameters ----------------------------------

def init_params(key, hid_dim, time_dim):
    """Deterministic parameter init mirroring the PyTorch module's shapes."""
    k1, k2, k3, k4 = jax.random.split(key, 4)
    din = hid_dim + time_dim

    # TimeEncode: w = 1 / 10**linspace(0, 9, time_dim), b = 0  (TGAT convention)
    w_te = (1.0 / 10.0 ** np.linspace(0, 9, time_dim)).astype(np.float32)
    b_te = np.zeros((time_dim,), dtype=np.float32)

    # fc1: xavier_normal_ weight (hid, din), default-ish uniform bias
    std1 = float(np.sqrt(2.0 / (din + hid_dim)))
    w1 = jax.random.normal(k1, (hid_dim, din), jnp.float32) * std1
    b1 = jax.random.uniform(k2, (hid_dim,), jnp.float32,
                            -1.0 / np.sqrt(din), 1.0 / np.sqrt(din))

    # fc2: xavier_normal_ weight (1, hid)
    std2 = float(np.sqrt(2.0 / (hid_dim + 1)))
    w2 = jax.random.normal(k3, (1, hid_dim), jnp.float32) * std2
    b2 = jax.random.uniform(k4, (1,), jnp.float32,
                            -1.0 / np.sqrt(hid_dim), 1.0 / np.sqrt(hid_dim))

    # Hoisted one-time prep: split/pre-transpose fc1 weight so nothing is
    # transposed (or concatenated) on the per-call path.
    w1_hs_t = jnp.asarray(w1[:, :hid_dim]).T      # (hid, hid)      hidden-state part
    w1_te_t = jnp.asarray(w1[:, hid_dim:]).T      # (time_dim, hid) time-encode part

    return dict(w_te=jnp.asarray(w_te), b_te=jnp.asarray(b_te),
                w1=w1, b1=b1, w2=w2, b2=b2,
                w1_hs_t=w1_hs_t, w1_te_t=w1_te_t)


# ------------------------------ forward pass ---------------------------------

def node_prob_forward(params, hidden_states, t, *, force_pallas=False, tile_n=8192):
    """hidden_states: (N, hid_dim) f32 or bf16; t: scalar time."""
    N = hidden_states.shape[0]
    # TimeEncode on scalar t -> (time_dim,), then fold its fc1 contribution into
    # the bias (te is identical for every row) instead of concatenating.
    te = jnp.cos(jnp.float32(t) * params["w_te"] + params["b_te"])
    b1_eff = params["b1"] + te @ params["w1_te_t"]                  # (hid,) f32

    if N == 0:
        return jnp.zeros((0,), jnp.float32)
    if N < 1024 and not force_pallas:
        # Tiny inputs: pallas_call + DMA pipeline startup dwarfs the work; a
        # fused XLA matmul is faster and avoids padding waste.
        h = jnp.maximum(hidden_states @ params["w1_hs_t"] + b1_eff, 0.0)
        return (h @ params["w2"][0] + params["b2"][0]).astype(jnp.float32)

    # No dtype up-cast here: x streams into the kernel in its native dtype
    # (pass bf16 hidden_states for ~2x fewer HBM bytes; accumulation is f32).
    return nodeprob_mlp(hidden_states, params["w1_hs_t"], b1_eff,
                        params["w2"], params["b2"][0], tile_n=tile_n)


def node_prob_reference(params, hidden_states, t):
    """Pure-JAX f32 reference of the original concat-based math (validation)."""
    N = hidden_states.shape[0]
    te = jnp.cos(jnp.float32(t) * params["w_te"] + params["b_te"])
    te_rep = jnp.broadcast_to(te[None, :], (N, te.shape[0]))
    x = jnp.concatenate([hidden_states.astype(jnp.float32), te_rep], axis=1)
    h = jnp.maximum(x @ params["w1"].T + params["b1"], 0.0)
    return (h @ params["w2"].T + params["b2"])[:, 0]


# ---------------------------------- main -------------------------------------

if __name__ == "__main__":
    hid_dim, time_dim = 32, 16
    key = jax.random.PRNGKey(0)
    kp, kx1, kx2 = jax.random.split(key, 3)
    params = init_params(kp, hid_dim, time_dim)
    t = 3.5  # scalar timestamp

    # --- Test 1: spec-sized demo (N=8, f32), Pallas path forced so the kernel runs.
    N1 = 8
    hs1 = jax.random.normal(kx1, (N1, hid_dim), jnp.float32)
    p1 = jax.block_until_ready(node_prob_forward(params, hs1, t, force_pallas=True))
    r1 = node_prob_reference(params, hs1, t)
    np.testing.assert_allclose(np.asarray(p1), np.asarray(r1), rtol=1e-4, atol=1e-5)
    assert p1.shape == (N1,)

    # --- Test 2: ragged multi-tile grid (N=300 rows, tile_n=128 -> 3 grid steps), f32.
    N2 = 300
    hs2 = jax.random.normal(kx2, (N2, hid_dim), jnp.float32)
    p2 = jax.block_until_ready(
        node_prob_forward(params, hs2, t, force_pallas=True, tile_n=128))
    r2 = node_prob_reference(params, hs2, t)
    np.testing.assert_allclose(np.asarray(p2), np.asarray(r2), rtol=1e-4, atol=1e-5)
    assert p2.shape == (N2,)

    # --- Test 3: bf16 streaming (the recommended HBM-roofline path), loose tolerance.
    p3 = jax.block_until_ready(
        node_prob_forward(params, hs2.astype(jnp.bfloat16), t,
                          force_pallas=True, tile_n=128))
    np.testing.assert_allclose(np.asarray(p3), np.asarray(r2), rtol=1e-1, atol=1e-1)

    print("KERNEL_OK")
</pallas_src>

<mosaic_0001>
module attributes {stable_mosaic.version = 11 : i64} {
  func.func @nodeprob_kernel(%arg0: i32, %arg1: memref<128x32xf32, #tpu.memory_space<vmem>>, %arg2: memref<32x32xf32, #tpu.memory_space<vmem>>, %arg3: memref<1x32xf32, #tpu.memory_space<vmem>>, %arg4: memref<1x32xf32, #tpu.memory_space<vmem>>, %arg5: memref<1x1xf32, #tpu.memory_space<smem>>, %arg6: memref<1x128xf32, #tpu.memory_space<vmem>>) attributes {dimension_semantics = [#tpu.dimension_semantics<parallel>], iteration_bounds = array<i64: 1>, scalar_prefetch = 0 : i64, scratch_operands = 0 : i64, tpu.core_type = #tpu.core_type<tc>, window_params = [{transform_indices = @transform_0, window_bounds = array<i64: 128, 32>}, {pipeline_mode = #tpu.pipeline_mode<synchronous>, transform_indices = @transform_1, window_bounds = array<i64: 32, 32>}, {pipeline_mode = #tpu.pipeline_mode<synchronous>, transform_indices = @transform_2, window_bounds = array<i64: 1, 32>}, {pipeline_mode = #tpu.pipeline_mode<synchronous>, transform_indices = @transform_3, window_bounds = array<i64: 1, 32>}, {transform_indices = @transform_4, window_bounds = array<i64: 1, 1>}, {transform_indices = @transform_5, window_bounds = array<i64: 1, 128>}]} {
    %c0 = arith.constant 0 : index
    %c0_0 = arith.constant 0 : index
    %0 = vector.load %arg1[%c0, %c0_0] : memref<128x32xf32, #tpu.memory_space<vmem>>, vector<128x32xf32>
    %c0_1 = arith.constant 0 : index
    %c0_2 = arith.constant 0 : index
    %1 = vector.load %arg2[%c0_1, %c0_2] : memref<32x32xf32, #tpu.memory_space<vmem>>, vector<32x32xf32>
    %cst = arith.constant dense<0.000000e+00> : vector<128x32xf32>
    %2 = tpu.matmul %0, %1, %cst {dimension_numbers = #tpu.dot_dimension_numbers<[1], [0], [0], [1], [0, 0, 1, 1], [], []>} : vector<128x32xf32>, vector<32x32xf32>, vector<128x32xf32> -> vector<128x32xf32>
    %c0_3 = arith.constant 0 : index
    %c0_4 = arith.constant 0 : index
    %3 = vector.load %arg3[%c0_3, %c0_4] : memref<1x32xf32, #tpu.memory_space<vmem>>, vector<1x32xf32>
    %4 = vector.broadcast %3 : vector<1x32xf32> to vector<128x32xf32>
    %5 = arith.addf %2, %4 : vector<128x32xf32>
    %cst_5 = arith.constant 0.000000e+00 : f32
    %6 = vector.broadcast %cst_5 : f32 to vector<128x32xf32>
    %7 = arith.maximumf %5, %6 : vector<128x32xf32>
    %c0_6 = arith.constant 0 : index
    %c0_7 = arith.constant 0 : index
    %8 = vector.load %arg4[%c0_6, %c0_7] : memref<1x32xf32, #tpu.memory_space<vmem>>, vector<1x32xf32>
    %cst_8 = arith.constant dense<0.000000e+00> : vector<1x128xf32>
    %9 = tpu.matmul %8, %7, %cst_8 {dimension_numbers = #tpu.dot_dimension_numbers<[1], [1], [0], [0], [0, 0, 1, 0], [], []>} : vector<1x32xf32>, vector<128x32xf32>, vector<1x128xf32> -> vector<1x128xf32>
    %c0_9 = arith.constant 0 : index
    %c0_10 = arith.constant 0 : index
    %10 = memref.load %arg5[%c0_9, %c0_10] : memref<1x1xf32, #tpu.memory_space<smem>>
    %11 = vector.broadcast %10 : f32 to vector<1x128xf32>
    %12 = arith.addf %9, %11 : vector<1x128xf32>
    %c0_11 = arith.constant 0 : index
    %c0_12 = arith.constant 0 : index
    %13 = vector.load %arg6[%c0_11, %c0_12] : memref<1x128xf32, #tpu.memory_space<vmem>>, vector<1x128xf32>
    tpu.vector_store %arg6[%c0_11, %c0_12], %12 {strides = array<i32>} : memref<1x128xf32, #tpu.memory_space<vmem>>, vector<1x128xf32>,
    return
  }
  func.func @transform_0(%arg0: i32) -> (i32, i32) {
    %c0_i32 = arith.constant 0 : i32
    %c0_i32_0 = arith.constant 0 : i32
    return %arg0, %c0_i32 : i32, i32
  }
  func.func @transform_1(%arg0: i32) -> (i32, i32) {
    %c0_i32 = arith.constant 0 : i32
    %c0_i32_0 = arith.constant 0 : i32
    %c0_i32_1 = arith.constant 0 : i32
    return %c0_i32, %c0_i32_0 : i32, i32
  }
  func.func @transform_2(%arg0: i32) -> (i32, i32) {
    %c0_i32 = arith.constant 0 : i32
    %c0_i32_0 = arith.constant 0 : i32
    %c0_i32_1 = arith.constant 0 : i32
    return %c0_i32, %c0_i32_0 : i32, i32
  }
  func.func @transform_3(%arg0: i32) -> (i32, i32) {
    %c0_i32 = arith.constant 0 : i32
    %c0_i32_0 = arith.constant 0 : i32
    %c0_i32_1 = arith.constant 0 : i32
    return %c0_i32, %c0_i32_0 : i32, i32
  }
  func.func @transform_4(%arg0: i32) -> (i32, i32) {
    %c0_i32 = arith.constant 0 : i32
    %c0_i32_0 = arith.constant 0 : i32
    %c0_i32_1 = arith.constant 0 : i32
    return %c0_i32, %c0_i32_0 : i32, i32
  }
  func.func @transform_5(%arg0: i32) -> (i32, i32) {
    %c0_i32 = arith.constant 0 : i32
    %c0_i32_0 = arith.constant 0 : i32
    return %c0_i32, %arg0 : i32, i32
  }
}

</mosaic_0001>

<bundles_post_ra>
// kernel: tpu_custom_call.1
= control target key start
LH: loop header
LB: loop body
LE: loop exit
PB: predicated region body
PF: predicated region fallthrough
CT: control target
= control target key end

     0   :  { %11 = vsyncpa [#allocation4], 0  ;;  %s753_s0 = inlined_call_operand.hbm [shape: f32[8,32], index: 0, kind: input, shape index: {}]   ;;  %s754_s1 = inlined_call_operand.hbm [shape: f32[32,32], index: 1, kind: input, shape index: {}]   ;;  %s755_s2 = inlined_call_operand.vmem [shape: f32[1,32], index: 2, kind: input, shape index: {}]   ;;  %s756_s3 = inlined_call_operand.vmem [shape: f32[1,32], index: 3, kind: input, shape index: {}]   ;;  %s757_s4 = inlined_call_operand.<no memory space> [shape: f32[1,1], index: 4, kind: input, shape index: {}]   ;;  %s758_s5 = inlined_call_operand.hbm [shape: f32[1,8], index: 5, kind: output, shape index: {}]  }
   0x1   :  { %12 = vsyncpa [#allocation7], 0 }
   0x2   :  { %13 = vsyncpa [#allocation5], 0 }
   0x3   :  { %18 = vsyncadd [#allocation4], 1920  ;;  %s639_s18 = smov [#allocation3]  }
   0x4   :  { %s19_s19 = sshll.u32 %s639_s18, 4  ;;  %s20_s19 = int_to_ptr.vmem [resolvable:$true] %s19_s19 }
   0x5   :  { %s581_s20 = scalar_lea.vmem %s20_s19, 128  ;;  %s585_s21 = scalar_lea.vmem %s20_s19, 2048 }
   0x6   :  { %p582_p0 = scmp.ne.s32.totalorder %s20_s19, %s581_s20  ;;  %p586_p1 = scmp.lt.s32.totalorder %s20_s19, %s20_s19 }
   0x7   :  { %p587_p2 = scmp.lt.s32.totalorder %s585_s21, %s581_s20 }
   0x9   :  { %p588_p3 = por %p587_p2, %p586_p1 }
   0xb   :  { %p589_p4 = pnand %p588_p3, %p582_p0 }
   0xd   :  { %592 = shalt.err (!%p589_p4)
}
   0xe   :  { %s640_s22 = smov 128   ;;  %s641_s23 = smov 8  }
   0xf   :  { %25 = dma.hbm_to_vmem [thread:$0]  %s753_s0, 128, %s20_s19, [#allocation4], %s640_s22, %s640_s22, %s641_s23  }
  0x10   :  { %s642_s26 = smov [#allocation6]  }
  0x11   :  { %s31_s27 = sshll.u32 %s642_s26, 4  ;;  %s32_s27 = int_to_ptr.vmem [resolvable:$true] %s31_s27 }
  0x12   :  { %s601_s28 = scalar_lea.vmem %s32_s27, 512  ;;  %p606_p6 = scmp.lt.s32.totalorder %s32_s27, %s32_s27 }
  0x13   :  { %p602_p5 = scmp.ne.s32.totalorder %s32_s27, %s601_s28  ;;  %p607_p7 = scmp.lt.s32.totalorder %s601_s28, %s601_s28 }
  0x15   :  { %p608_p8 = por %p607_p7, %p606_p6 }
  0x17   :  { %p609_p9 = pnand %p608_p8, %p602_p5 }
  0x19   :  { %612 = shalt.err (!%p609_p9)
}
  0x1a   :  { %37 = dma.hbm_to_vmem [thread:$0]  %s754_s1, 512, %s32_s27, [#allocation7], %s640_s22, %s640_s22, %s641_s23  }
  0x1b   :  { %633 = dma.done.wait [#allocation4], 2048  }
  0x1c   :  { %634 = vsyncadd [#allocation4], 4294965248 }
  0x1d   :  { %635 = dma.done.wait [#allocation7], 512  }
  0x1e   :  { %636 = vsyncadd [#allocation7], 4294966784  ;;  %vm77_vm0 = vcmask 261120   ;;  %v69_v0 = vld [vmem:[#allocation6 + $0x18] sm:$0xff]  ;;  %v68_v1 = vld [vmem:[#allocation6 + $0x10] sm:$0xff]  ;;  %v643_v20 = vmov 0.0  }
  0x1f   :  { %499 = vmatprep.subr.mxu0 %v69_v0  ;;  %v50_v2 = vld [vmem:[#allocation3] sm:$0xff]  ;;  %v67_v3 = vld [vmem:[#allocation6 + $0x8] sm:$0xff]  ;;  %v52_v6 = vld [vmem:[#allocation3 + $0x10] sm:$0xff]  ;;  %531 = vmatprep.subr.mxu1 %v643_v20  ;;  %vm644_vm1 = vmmov 0   ;;  %s645_s9 = smov [#allocation8]  }
  0x20   :  { %500 = vmatpush3.msra.mxu0 %v69_v0  ;;  %507 = vmatprep.mubr.msk.f32.mxu0 %vm77_vm0, %v50_v2  ;;  %v66_v4 = vld [vmem:[#allocation6] sm:$0xff]  ;;  %v51_v5 = vld [vmem:[#allocation3 + $0x8] sm:$0xff]  ;;  %v53_v7 = vld [vmem:[#allocation3 + $0x18] sm:$0xff]  ;;  %s418_s10 = sshll.u32 %s645_s9, 4  ;;  %s419_s10 = int_to_ptr.vmem [resolvable:$true] %s418_s10 }
  0x21   :  { %501 = vmatprep.subr.mxu0 %v68_v1  ;;  %v54_v8 = vld [vmem:[#allocation3 + $0x20] sm:$0xff]  ;;  %v55_v9 = vld [vmem:[#allocation3 + $0x28] sm:$0xff]  ;;  %v56_v10 = vld [vmem:[#allocation3 + $0x30] sm:$0xff]  ;;  %563 = vmatprep.mubr.msk.f32.mxu1 %vm644_vm1, %v643_v20  ;;  %s613_s11 = scalar_lea.vmem %s419_s10, 16  ;;  %s617_s12 = scalar_lea.vmem %s419_s10, 32 }
  0x22   :  { %502 = vmatpush3.msra.mxu0 %v68_v1  ;;  %v57_v11 = vld [vmem:[#allocation3 + $0x38] sm:$0xff]  ;;  %v58_v12 = vld [vmem:[#allocation3 + $0x40] sm:$0xff]  ;;  %v59_v13 = vld [vmem:[#allocation3 + $0x48] sm:$0xff]  ;;  %p614_p10 = scmp.ne.s32.totalorder %s419_s10, %s613_s11  ;;  %p618_p11 = scmp.lt.s32.totalorder %s419_s10, %s419_s10 }
  0x23   :  { %503 = vmatprep.subr.mxu0 %v67_v3  ;;  %v60_v14 = vld [vmem:[#allocation3 + $0x50] sm:$0xff]  ;;  %v61_v15 = vld [vmem:[#allocation3 + $0x58] sm:$0xff]  ;;  %v62_v16 = vld [vmem:[#allocation3 + $0x60] sm:$0xff]  ;;  %p619_p12 = scmp.lt.s32.totalorder %s617_s12, %s613_s11 }
  0x24   :  { %504 = vmatpush3.msra.mxu0 %v67_v3  ;;  %v63_v17 = vld [vmem:[#allocation3 + $0x68] sm:$0xff]  ;;  %v64_v18 = vld [vmem:[#allocation3 + $0x70] sm:$0xff]  ;;  %v65_v19 = vld [vmem:[#allocation3 + $0x78] sm:$0xff] }
  0x25   :  { %505 = vmatprep.subr.mxu0 %v66_v4  ;;  %v428_v35 = vld [vmem:[%s755_s2] ss:$0 sm:$0xff]  ;;  %p620_p13 = por %p619_p12, %p618_p11 }
  0x26   :  { %506 = vmatpush3.msra.mxu0 %v66_v4 }
  0x27   :  { %508 = vmatmul.mubr.msk.f32.vlgmr.msra.gmra.mxu0 %vm77_vm0, %v51_v5  ;;  %p621_p0 = pnand %p620_p13, %p614_p10 }
  0x28   :  { %510 = vmatprep.mubr.msk.f32.mxu0 %vm77_vm0, %v52_v6  ;;  %v287_v6 = vld [vmem:[%s756_s3] sm:$0x1] }
  0x2b   :  { %511 = vmatmul.mubr.msk.f32.gmra.mxu0 %vm77_vm0, %v53_v7  ;;  %v289_v7 = vstv %s757_s4 }
  0x2c   :  { %513 = vmatprep.mubr.msk.f32.mxu0 %vm77_vm0, %v54_v8 }
  0x2f   :  { %514 = vmatmul.mubr.msk.f32.gmra.mxu0 %vm77_vm0, %v55_v9 }
  0x30   :  { %516 = vmatprep.mubr.msk.f32.mxu0 %vm77_vm0, %v56_v10 }
  0x33   :  { %517 = vmatmul.mubr.msk.f32.gmra.mxu0 %vm77_vm0, %v57_v11 }
  0x34   :  { %519 = vmatprep.mubr.msk.f32.mxu0 %vm77_vm0, %v58_v12 }
  0x37   :  { %520 = vmatmul.mubr.msk.f32.gmra.mxu0 %vm77_vm0, %v59_v13 }
  0x38   :  { %522 = vmatprep.mubr.msk.f32.mxu0 %vm77_vm0, %v60_v14 }
  0x3b   :  { %523 = vmatmul.mubr.msk.f32.gmra.mxu0 %vm77_vm0, %v61_v15 }
  0x3c   :  { %525 = vmatprep.mubr.msk.f32.mxu0 %vm77_vm0, %v62_v16 }
  0x3f   :  { %526 = vmatmul.mubr.msk.f32.gmra.mxu0 %vm77_vm0, %v63_v17 }
  0x40   :  { %528 = vmatprep.mubr.msk.f32.mxu0 %vm77_vm0, %v64_v18 }
  0x43   :  { %529 = vmatmul.mubr.msk.f32.gmra.mxu0 %vm77_vm0, %v65_v19 }
  0xe7   :  { %v700_v21 = vpop.f32.mrf.mxu0 }
  0xe8   :  { %v198_v1 = vadd.f32 %v700_v21, %v428_v35 }
  0xe9   :  { %v702_v22 = vpop.f32.mrf.mxu0 }
  0xea   :  { %v272_v3 = vmax.f32 %v198_v1, 0.0  ;;  %v193_v4 = vadd.f32 %v428_v35, %v702_v22 }
  0xeb   :  { %v512_v23 = vpop.f32.mrf.mxu0 }
  0xec   :  { %v208_v61 = vadd.f32 %v512_v23, %v428_v35  ;;  %v271_v5 = vmax.f32 %v193_v4, 0.0 }
  0xed   :  { %v704_v24 = vpop.f32.mrf.mxu0 }
  0xee   :  { %v274_v63 = vmax.f32 %v208_v61, 0.0  ;;  %v203_v0 = vadd.f32 %v428_v35, %v704_v24 }
  0xef   :  { %v515_v25 = vpop.f32.mrf.mxu0 }
  0xf0   :  { %v218_v57 = vadd.f32 %v515_v25, %v428_v35  ;;  %v273_v2 = vmax.f32 %v203_v0, 0.0 }
  0xf1   :  { %v212_v26 = vpop.f32.mrf.mxu0 }
  0xf2   :  { %v276_v59 = vmax.f32 %v218_v57, 0.0  ;;  %v213_v60 = vadd.f32 %v428_v35, %v212_v26 }
  0xf3   :  { %v518_v27 = vpop.f32.mrf.mxu0 }
  0xf4   :  { %v228_v53 = vadd.f32 %v518_v27, %v428_v35  ;;  %v275_v62 = vmax.f32 %v213_v60, 0.0 }
  0xf5   :  { %v222_v28 = vpop.f32.mrf.mxu0 }
  0xf6   :  { %v278_v55 = vmax.f32 %v228_v53, 0.0  ;;  %v223_v56 = vadd.f32 %v428_v35, %v222_v28 }
  0xf7   :  { %v521_v29 = vpop.f32.mrf.mxu0 }
  0xf8   :  { %v238_v49 = vadd.f32 %v521_v29, %v428_v35  ;;  %v277_v58 = vmax.f32 %v223_v56, 0.0 }
  0xf9   :  { %v232_v30 = vpop.f32.mrf.mxu0 }
  0xfa   :  { %v280_v51 = vmax.f32 %v238_v49, 0.0  ;;  %v233_v52 = vadd.f32 %v428_v35, %v232_v30 }
  0xfb   :  { %v524_v31 = vpop.f32.mrf.mxu0 }
  0xfc   :  { %v248_v45 = vadd.f32 %v524_v31, %v428_v35  ;;  %v279_v54 = vmax.f32 %v233_v52, 0.0 }
  0xfd   :  { %v242_v32 = vpop.f32.mrf.mxu0 }
  0xfe   :  { %v282_v47 = vmax.f32 %v248_v45, 0.0  ;;  %v243_v48 = vadd.f32 %v428_v35, %v242_v32 }
  0xff   :  { %v527_v33 = vpop.f32.mrf.mxu0 }
 0x100   :  { %v258_v41 = vadd.f32 %v527_v33, %v428_v35  ;;  %v281_v50 = vmax.f32 %v243_v48, 0.0 }
 0x101   :  { %v252_v34 = vpop.f32.mrf.mxu0 }
 0x102   :  { %v284_v43 = vmax.f32 %v258_v41, 0.0  ;;  %v253_v44 = vadd.f32 %v428_v35, %v252_v34 }
 0x103   :  { %v530_v36 = vpop.f32.mrf.mxu0 }
 0x104   :  { %v268_v37 = vadd.f32 %v530_v36, %v428_v35  ;;  %v283_v46 = vmax.f32 %v253_v44, 0.0 }
 0x105   :  { %v262_v38 = vpop.f32.mrf.mxu0 }
 0x106   :  { %v286_v39 = vmax.f32 %v268_v37, 0.0  ;;  %v263_v40 = vadd.f32 %v428_v35, %v262_v38 }
 0x108   :  { %532 = vmatpush3.xpose.msk.msra.mxu1 %vm77_vm0, %v286_v39  ;;  %v285_v42 = vmax.f32 %v263_v40, 0.0 }
 0x109   :  { %533 = vmatprep.subr.mxu1 %v643_v20 }
 0x10c   :  { %534 = vmatpush3.xpose.msk.msra.mxu1 %vm77_vm0, %v285_v42 }
 0x10d   :  { %535 = vmatprep.subr.mxu1 %v643_v20 }
 0x110   :  { %536 = vmatpush3.xpose.msk.msra.mxu1 %vm77_vm0, %v284_v43 }
 0x111   :  { %537 = vmatprep.subr.mxu1 %v643_v20 }
 0x114   :  { %538 = vmatpush3.xpose.msk.msra.mxu1 %vm77_vm0, %v283_v46 }
 0x115   :  { %539 = vmatprep.subr.mxu1 %v643_v20 }
 0x118   :  { %540 = vmatpush3.xpose.msk.msra.mxu1 %vm77_vm0, %v282_v47 }
 0x119   :  { %541 = vmatprep.subr.mxu1 %v643_v20 }
 0x11c   :  { %542 = vmatpush3.xpose.msk.msra.mxu1 %vm77_vm0, %v281_v50 }
 0x11d   :  { %543 = vmatprep.subr.mxu1 %v643_v20 }
 0x120   :  { %544 = vmatpush3.xpose.msk.msra.mxu1 %vm77_vm0, %v280_v51 }
 0x121   :  { %545 = vmatprep.subr.mxu1 %v643_v20 }
 0x124   :  { %546 = vmatpush3.xpose.msk.msra.mxu1 %vm77_vm0, %v279_v54 }
 0x125   :  { %547 = vmatprep.subr.mxu1 %v643_v20 }
 0x128   :  { %548 = vmatpush3.xpose.msk.msra.mxu1 %vm77_vm0, %v278_v55 }
 0x129   :  { %549 = vmatprep.subr.mxu1 %v643_v20 }
 0x12c   :  { %550 = vmatpush3.xpose.msk.msra.mxu1 %vm77_vm0, %v277_v58 }
 0x12d   :  { %551 = vmatprep.subr.mxu1 %v643_v20 }
 0x130   :  { %552 = vmatpush3.xpose.msk.msra.mxu1 %vm77_vm0, %v276_v59 }
 0x131   :  { %553 = vmatprep.subr.mxu1 %v643_v20 }
 0x134   :  { %554 = vmatpush3.xpose.msk.msra.mxu1 %vm77_vm0, %v275_v62 }
 0x135   :  { %555 = vmatprep.subr.mxu1 %v643_v20 }
 0x138   :  { %556 = vmatpush3.xpose.msk.msra.mxu1 %vm77_vm0, %v274_v63 }
 0x139   :  { %557 = vmatprep.subr.mxu1 %v643_v20 }
 0x13c   :  { %558 = vmatpush3.xpose.msk.msra.mxu1 %vm77_vm0, %v273_v2 }
 0x13d   :  { %559 = vmatprep.subr.mxu1 %v643_v20 }
 0x140   :  { %560 = vmatpush3.xpose.msk.msra.mxu1 %vm77_vm0, %v272_v3 }
 0x141   :  { %561 = vmatprep.subr.mxu1 %v643_v20 }
 0x144   :  { %562 = vmatpush3.xpose.msk.msra.mxu1 %vm77_vm0, %v271_v5 }
 0x147   :  { %564 = vmatmul.mubr.msk.f32.vlgmr.msra.gmra.mxu1 %vm77_vm0, %v287_v6 }
 0x207   :  { %v407_v8 = vpop.f32.mrf.mxu1 }
 0x208   :  { %v408_v9 = vadd.f32 %v407_v8, %v289_v7 }
 0x209   :  { %v565_v10 = vpop.f32.mrf.mxu1 }
 0x20a   :  { %411 = vst [vmem:[#allocation8] sm:$0x1] %v408_v9 }
 0x20b   :  { %624 = shalt.err (!%p621_p0)
}
 0x20c   :  { %421 = dma.vmem_to_hbm [thread:$0]  %s419_s10, 16, %s758_s5, [#allocation5]  }
 0x20d   :  { %637 = dma.done.wait [#allocation5], 16  }
 0x20e   :  { %638 = vsyncadd [#allocation5], 4294967280 }
 0x20f   :  { %425 = vsyncpa [#allocation4], 1 }
 0x210   :  { %426 = vsyncpa [#allocation7], 1 }
 0x211   :  { %427 = vsyncpa [#allocation5], 1 }

</bundles_post_ra>
